<compile_context>
chip_gen: v7x
topology: tpu7x:2x2x1
jax: 0.10.0
libtpu: 0.0.40
codegen_flags: <defaults>
</compile_context>

<pallas_src>
import jax
import jax.numpy as jnp
import numpy as np
from jax.experimental import pallas as pl
from jax.experimental.pallas import tpu as pltpu

POOL = 4          # MaxPool1d kernel/stride
KSIZE = 9         # Conv1d kernel size
PAD = 4           # Conv1d padding
EPS = 1e-5        # BatchNorm eps


def down_kernel(x_ref, dsel_ref, mask_ref, w1_ref, w2_ref,
                g1_ref, b1_ref, g2_ref, b2_ref, o_ref):
    # x_ref   : (N, Cin_p, L0)   f32   activations, native NCL (Cin zero-padded to 8k)
    # dsel_ref: (L0, L0//4)      bf16  stride-4 downsample 0/1 matrix
    # mask_ref: (K, N*L0//4)     f32   tap validity mask (0 where l+d leaves [0, seq))
    # w1_ref  : (Cmid, K*Cin_p)  bf16  folded conv1 weights (row = k*Cin_p + ci)
    # w2_ref  : (Cout, K*Cmid)   bf16  folded conv2 weights
    # g*/b*   : (C, 1)           f32   BatchNorm affine parameters
    # o_ref   : (N, Cout, L0//4) f32   lane-dense output
    n, cin_p, l0 = x_ref.shape
    seq = l0 // POOL
    total = n * seq
    f32 = jnp.float32

    dsel = dsel_ref[...]            # (L0, seq)   bf16, loaded once
    masks = mask_ref[...]           # (K, total)  f32,  loaded once

    # ---- MaxPool1d(4): running max via 3 static lane rolls (XLU) + jnp.maximum
    # (VPU), then ONE stride-4 downsample dot per batch element. Batch elements
    # are concatenated on the lane axis (128-aligned pieces) for the conv stage.
    pooled = []
    for nb in range(n):
        xs = x_ref[nb]                                        # (cin_p, L0) f32
        rm = xs
        for s in range(1, POOL):
            rm = jnp.maximum(rm, pltpu.roll(xs, shift=l0 - s, axis=1))
        # rm[:, i] = max(x[:, i:i+POOL]); wrapped lanes only affect i > L0-POOL,
        # which the downsample (i = POOL*j) never selects.
        pooled.append(jnp.dot(rm.astype(jnp.bfloat16), dsel,
                              preferred_element_type=f32))    # (cin_p, seq)
    h = jnp.concatenate(pooled, axis=1)                       # (cin_p, total) f32

    def conv_bn_relu(h, wf_ref, g_ref, b_ref):
        # Conv1d(k=9, pad=4, no bias) as ONE folded MXU dot over the whole
        # lane-batched slab. Taps = static lane rolls + precomputed validity
        # masks (zero-padding at segment edges and batch boundaries falls out).
        pieces = []
        for k in range(KSIZE):
            d = k - PAD
            if d == 0:
                pieces.append(h)
            else:
                rolled = pltpu.roll(h, shift=(-d) % total, axis=1)
                pieces.append(rolled * masks[k:k + 1, :])
        # f32 pieces -> aligned sublane concat, single cast to bf16 for the MXU.
        stack = jnp.concatenate(pieces, axis=0).astype(jnp.bfloat16)   # (K*cin, total)
        y = jnp.dot(wf_ref[...], stack, preferred_element_type=f32)    # (cout, total)

        # BatchNorm1d (training-mode batch stats over (N, L), biased var),
        # centered two-pass in f32, folded into one per-channel scale/shift.
        mean = jnp.mean(y, axis=1, keepdims=True)                      # (cout, 1)
        cen = y - mean
        var = jnp.mean(cen * cen, axis=1, keepdims=True)
        scale = g_ref[...] * jax.lax.rsqrt(var + EPS)
        shift = b_ref[...] - mean * scale
        return jnp.maximum(y * scale + shift, 0.0)                     # ReLU

    h = conv_bn_relu(h, w1_ref, g1_ref, b1_ref)
    h = conv_bn_relu(h, w2_ref, g2_ref, b2_ref)

    # Per-batch stores as aligned 128-wide lane slices (seq = 128 at demo size).
    for nb in range(n):
        o_ref[nb] = h[:, nb * seq:(nb + 1) * seq].astype(o_ref.dtype)


def down_forward(x_ncl, w1, w2, g1, b1, g2, b2):
    """x_ncl: (N, C_in, L0); w1/w2 in PyTorch layout (C_out, C_in, K); g/b: (C,)."""
    n, c_in, l0 = x_ncl.shape
    c_mid = w1.shape[0]
    c_out = w2.shape[0]
    # PyTorch MaxPool1d(4) floor-drops a remainder; we require an exact multiple.
    assert l0 % POOL == 0, "L must be a multiple of the pool size"
    seq = l0 // POOL
    total = n * seq

    # Zero-pad input channels to a multiple of 8 so every conv1 tap piece is an
    # aligned (8, lanes) sublane tile; zero channels contribute nothing.
    cin_p = ((c_in + 7) // 8) * 8
    x_p = x_ncl.astype(jnp.float32)
    if cin_p != c_in:
        x_p = jnp.pad(x_p, ((0, 0), (0, cin_p - c_in), (0, 0)))

    # Fold conv weights (C_out, C_in, K) -> (C_out, K*C_in_p) with row index
    # k*C_in_p + ci (matches the in-kernel tap-stacking order); bf16 MXU operands.
    w1_p = jnp.pad(w1.astype(jnp.float32), ((0, 0), (0, cin_p - c_in), (0, 0)))
    w1_f = jnp.transpose(w1_p, (0, 2, 1)).reshape(c_mid, KSIZE * cin_p).astype(jnp.bfloat16)
    w2_f = jnp.transpose(w2.astype(jnp.float32), (0, 2, 1)).reshape(c_out, KSIZE * c_mid).astype(jnp.bfloat16)
    g1_c = g1.reshape(c_mid, 1).astype(jnp.float32)
    b1_c = b1.reshape(c_mid, 1).astype(jnp.float32)
    g2_c = g2.reshape(c_out, 1).astype(jnp.float32)
    b2_c = b2.reshape(c_out, 1).astype(jnp.float32)

    # Precomputed constants (host numpy, DMA'd into VMEM):
    #   dsel[i, j] = 1 iff i == 4*j           (stride-4 pool downsample; exact in bf16)
    #   tapmask[k, b*seq + l] = 1 iff 0 <= l + (k - PAD) < seq   (conv edge/batch mask)
    dsel = jnp.asarray((np.arange(l0)[:, None] == POOL * np.arange(seq)[None, :])
                       .astype(np.float32), dtype=jnp.bfloat16)          # (L0, seq)
    lpos = np.tile(np.arange(seq), n)                                     # (total,)
    tapmask = np.stack(
        [((lpos + (k - PAD)) >= 0) & ((lpos + (k - PAD)) < seq) for k in range(KSIZE)]
    ).astype(np.float32)                                                  # (K, total)
    tapmask = jnp.asarray(tapmask)

    vmem = pl.BlockSpec(memory_space=pltpu.MemorySpace.VMEM)
    return pl.pallas_call(
        down_kernel,
        out_shape=jax.ShapeDtypeStruct((n, c_out, seq), jnp.float32),
        in_specs=[vmem] * 9,
        out_specs=vmem,
        compiler_params=pltpu.CompilerParams(vmem_limit_bytes=32 * 1024 * 1024),
    )(x_p, dsel, tapmask, w1_f, w2_f, g1_c, b1_c, g2_c, b2_c)


def reference_forward(x, w1, w2, g1, b1, g2, b2):
    """Pure-JAX f32 reference mirroring the PyTorch forward (training-mode BN)."""
    n, c, l0 = x.shape
    xp = jnp.max(x.reshape(n, c, l0 // POOL, POOL), axis=-1)

    def conv_bn_relu(h, w, g, b):
        y = jax.lax.conv_general_dilated(
            h, w, window_strides=(1,), padding=[(PAD, PAD)],
            dimension_numbers=('NCH', 'OIH', 'NCH'))
        mu = jnp.mean(y, axis=(0, 2), keepdims=True)
        var = jnp.mean((y - mu) ** 2, axis=(0, 2), keepdims=True)
        yn = (y - mu) * jax.lax.rsqrt(var + EPS)
        yn = yn * g.reshape(1, -1, 1) + b.reshape(1, -1, 1)
        return jnp.maximum(yn, 0.0)

    h = conv_bn_relu(xp, w1, g1, b1)
    return conv_bn_relu(h, w2, g2, b2)


if __name__ == "__main__":
    N, C_IN, C_OUT, L0 = 2, 4, 8, 512          # L0/POOL = 128 -> lane-dense output
    C_MID = C_OUT                              # DoubleConv default mid_channels

    key = jax.random.PRNGKey(0)
    kx, kw1, kw2 = jax.random.split(key, 3)

    x = jax.random.normal(kx, (N, C_IN, L0), dtype=jnp.float32)

    # Conv1d weights (PyTorch layout (out, in, k)), deterministic init.
    w1 = jax.random.normal(kw1, (C_MID, C_IN, KSIZE), jnp.float32) / np.sqrt(C_IN * KSIZE)
    w2 = jax.random.normal(kw2, (C_OUT, C_MID, KSIZE), jnp.float32) / np.sqrt(C_MID * KSIZE)
    # BatchNorm affine params (PyTorch default init: gamma=1, beta=0).
    g1, b1 = jnp.ones((C_MID,), jnp.float32), jnp.zeros((C_MID,), jnp.float32)
    g2, b2 = jnp.ones((C_OUT,), jnp.float32), jnp.zeros((C_OUT,), jnp.float32)

    out = jax.block_until_ready(down_forward(x, w1, w2, g1, b1, g2, b2))
    assert out.shape == (N, C_OUT, L0 // POOL), out.shape

    ref = jax.block_until_ready(reference_forward(x, w1, w2, g1, b1, g2, b2))
    # Kernel feeds bf16 operands to the MXU (f32 accumulation / f32 BN math);
    # tolerance reflects bf16 input rounding vs. the pure-f32 reference.
    np.testing.assert_allclose(np.asarray(out), np.asarray(ref), rtol=3e-2, atol=3e-2)

    print("KERNEL_OK")
</pallas_src>

<mosaic_0001>
module attributes {stable_mosaic.version = 11 : i64} {
  func.func @down_kernel(%arg0: memref<2x8x512xf32, #tpu.memory_space<vmem>>, %arg1: memref<512x128xbf16, #tpu.memory_space<vmem>>, %arg2: memref<9x256xf32, #tpu.memory_space<vmem>>, %arg3: memref<8x72xbf16, #tpu.memory_space<vmem>>, %arg4: memref<8x72xbf16, #tpu.memory_space<vmem>>, %arg5: memref<8x1xf32, #tpu.memory_space<vmem>>, %arg6: memref<8x1xf32, #tpu.memory_space<vmem>>, %arg7: memref<8x1xf32, #tpu.memory_space<vmem>>, %arg8: memref<8x1xf32, #tpu.memory_space<vmem>>, %arg9: memref<2x8x128xf32, #tpu.memory_space<vmem>>) attributes {dimension_semantics = [], scalar_prefetch = 0 : i64, scratch_operands = 0 : i64, tpu.core_type = #tpu.core_type<tc>} {
    %c0 = arith.constant 0 : index
    %c0_0 = arith.constant 0 : index
    %0 = vector.load %arg1[%c0, %c0_0] : memref<512x128xbf16, #tpu.memory_space<vmem>>, vector<512x128xbf16>
    %c0_1 = arith.constant 0 : index
    %c0_2 = arith.constant 0 : index
    %1 = vector.load %arg2[%c0_1, %c0_2] : memref<9x256xf32, #tpu.memory_space<vmem>>, vector<9x256xf32>
    %c0_3 = arith.constant 0 : index
    %c0_4 = arith.constant 0 : index
    %c0_5 = arith.constant 0 : index
    %2 = vector.load %arg0[%c0_3, %c0_4, %c0_5] : memref<2x8x512xf32, #tpu.memory_space<vmem>>, vector<1x8x512xf32>
    %3 = vector.shape_cast %2 : vector<1x8x512xf32> to vector<8x512xf32>
    %c511_i32 = arith.constant 511 : i32
    %4 = tpu.dynamic_rotate %3 by %c511_i32 dim 1 : vector<8x512xf32>, i32 -> vector<8x512xf32>
    %5 = arith.maximumf %3, %4 : vector<8x512xf32>
    %c510_i32 = arith.constant 510 : i32
    %6 = tpu.dynamic_rotate %3 by %c510_i32 dim 1 : vector<8x512xf32>, i32 -> vector<8x512xf32>
    %7 = arith.maximumf %5, %6 : vector<8x512xf32>
    %c509_i32 = arith.constant 509 : i32
    %8 = tpu.dynamic_rotate %3 by %c509_i32 dim 1 : vector<8x512xf32>, i32 -> vector<8x512xf32>
    %9 = arith.maximumf %7, %8 : vector<8x512xf32>
    %10 = arith.truncf %9 : vector<8x512xf32> to vector<8x512xbf16>
    %cst = arith.constant dense<0.000000e+00> : vector<8x128xf32>
    %11 = tpu.matmul %10, %0, %cst {dimension_numbers = #tpu.dot_dimension_numbers<[1], [0], [0], [1], [0, 0, 1, 1], [], []>} : vector<8x512xbf16>, vector<512x128xbf16>, vector<8x128xf32> -> vector<8x128xf32>
    %c1 = arith.constant 1 : index
    %c0_6 = arith.constant 0 : index
    %c0_7 = arith.constant 0 : index
    %12 = vector.load %arg0[%c1, %c0_6, %c0_7] : memref<2x8x512xf32, #tpu.memory_space<vmem>>, vector<1x8x512xf32>
    %13 = vector.shape_cast %12 : vector<1x8x512xf32> to vector<8x512xf32>
    %c511_i32_8 = arith.constant 511 : i32
    %14 = tpu.dynamic_rotate %13 by %c511_i32_8 dim 1 : vector<8x512xf32>, i32 -> vector<8x512xf32>
    %15 = arith.maximumf %13, %14 : vector<8x512xf32>
    %c510_i32_9 = arith.constant 510 : i32
    %16 = tpu.dynamic_rotate %13 by %c510_i32_9 dim 1 : vector<8x512xf32>, i32 -> vector<8x512xf32>
    %17 = arith.maximumf %15, %16 : vector<8x512xf32>
    %c509_i32_10 = arith.constant 509 : i32
    %18 = tpu.dynamic_rotate %13 by %c509_i32_10 dim 1 : vector<8x512xf32>, i32 -> vector<8x512xf32>
    %19 = arith.maximumf %17, %18 : vector<8x512xf32>
    %20 = arith.truncf %19 : vector<8x512xf32> to vector<8x512xbf16>
    %cst_11 = arith.constant dense<0.000000e+00> : vector<8x128xf32>
    %21 = tpu.matmul %20, %0, %cst_11 {dimension_numbers = #tpu.dot_dimension_numbers<[1], [0], [0], [1], [0, 0, 1, 1], [], []>} : vector<8x512xbf16>, vector<512x128xbf16>, vector<8x128xf32> -> vector<8x128xf32>
    %22 = tpu.concatenate %11, %21 in 1 : vector<8x128xf32>, vector<8x128xf32> -> vector<8x256xf32>
    %c4_i32 = arith.constant 4 : i32
    %23 = tpu.dynamic_rotate %22 by %c4_i32 dim 1 : vector<8x256xf32>, i32 -> vector<8x256xf32>
    %24 = vector.extract_strided_slice %1 {offsets = [0, 0], sizes = [1, 256], strides = [1, 1]} : vector<9x256xf32> to vector<1x256xf32>
    %25 = vector.broadcast %24 : vector<1x256xf32> to vector<8x256xf32>
    %26 = arith.mulf %23, %25 : vector<8x256xf32>
    %c3_i32 = arith.constant 3 : i32
    %27 = tpu.dynamic_rotate %22 by %c3_i32 dim 1 : vector<8x256xf32>, i32 -> vector<8x256xf32>
    %28 = vector.extract_strided_slice %1 {offsets = [1, 0], sizes = [1, 256], strides = [1, 1]} : vector<9x256xf32> to vector<1x256xf32>
    %29 = vector.broadcast %28 : vector<1x256xf32> to vector<8x256xf32>
    %30 = arith.mulf %27, %29 : vector<8x256xf32>
    %c2_i32 = arith.constant 2 : i32
    %31 = tpu.dynamic_rotate %22 by %c2_i32 dim 1 : vector<8x256xf32>, i32 -> vector<8x256xf32>
    %32 = vector.extract_strided_slice %1 {offsets = [2, 0], sizes = [1, 256], strides = [1, 1]} : vector<9x256xf32> to vector<1x256xf32>
    %33 = vector.broadcast %32 : vector<1x256xf32> to vector<8x256xf32>
    %34 = arith.mulf %31, %33 : vector<8x256xf32>
    %c1_i32 = arith.constant 1 : i32
    %35 = tpu.dynamic_rotate %22 by %c1_i32 dim 1 : vector<8x256xf32>, i32 -> vector<8x256xf32>
    %36 = vector.extract_strided_slice %1 {offsets = [3, 0], sizes = [1, 256], strides = [1, 1]} : vector<9x256xf32> to vector<1x256xf32>
    %37 = vector.broadcast %36 : vector<1x256xf32> to vector<8x256xf32>
    %38 = arith.mulf %35, %37 : vector<8x256xf32>
    %c255_i32 = arith.constant 255 : i32
    %39 = tpu.dynamic_rotate %22 by %c255_i32 dim 1 : vector<8x256xf32>, i32 -> vector<8x256xf32>
    %40 = vector.extract_strided_slice %1 {offsets = [5, 0], sizes = [1, 256], strides = [1, 1]} : vector<9x256xf32> to vector<1x256xf32>
    %41 = vector.broadcast %40 : vector<1x256xf32> to vector<8x256xf32>
    %42 = arith.mulf %39, %41 : vector<8x256xf32>
    %c254_i32 = arith.constant 254 : i32
    %43 = tpu.dynamic_rotate %22 by %c254_i32 dim 1 : vector<8x256xf32>, i32 -> vector<8x256xf32>
    %44 = vector.extract_strided_slice %1 {offsets = [6, 0], sizes = [1, 256], strides = [1, 1]} : vector<9x256xf32> to vector<1x256xf32>
    %45 = vector.broadcast %44 : vector<1x256xf32> to vector<8x256xf32>
    %46 = arith.mulf %43, %45 : vector<8x256xf32>
    %c253_i32 = arith.constant 253 : i32
    %47 = tpu.dynamic_rotate %22 by %c253_i32 dim 1 : vector<8x256xf32>, i32 -> vector<8x256xf32>
    %48 = vector.extract_strided_slice %1 {offsets = [7, 0], sizes = [1, 256], strides = [1, 1]} : vector<9x256xf32> to vector<1x256xf32>
    %49 = vector.broadcast %48 : vector<1x256xf32> to vector<8x256xf32>
    %50 = arith.mulf %47, %49 : vector<8x256xf32>
    %c252_i32 = arith.constant 252 : i32
    %51 = tpu.dynamic_rotate %22 by %c252_i32 dim 1 : vector<8x256xf32>, i32 -> vector<8x256xf32>
    %52 = vector.extract_strided_slice %1 {offsets = [8, 0], sizes = [1, 256], strides = [1, 1]} : vector<9x256xf32> to vector<1x256xf32>
    %53 = vector.broadcast %52 : vector<1x256xf32> to vector<8x256xf32>
    %54 = arith.mulf %51, %53 : vector<8x256xf32>
    %55 = tpu.concatenate %26, %30, %34, %38, %22, %42, %46, %50, %54 in 0 : vector<8x256xf32>, vector<8x256xf32>, vector<8x256xf32>, vector<8x256xf32>, vector<8x256xf32>, vector<8x256xf32>, vector<8x256xf32>, vector<8x256xf32>, vector<8x256xf32> -> vector<72x256xf32>
    %56 = arith.truncf %55 : vector<72x256xf32> to vector<72x256xbf16>
    %c0_12 = arith.constant 0 : index
    %c0_13 = arith.constant 0 : index
    %57 = vector.load %arg3[%c0_12, %c0_13] : memref<8x72xbf16, #tpu.memory_space<vmem>>, vector<8x72xbf16>
    %cst_14 = arith.constant dense<0.000000e+00> : vector<8x256xf32>
    %58 = tpu.matmul %57, %56, %cst_14 {dimension_numbers = #tpu.dot_dimension_numbers<[1], [0], [0], [1], [0, 0, 1, 1], [], []>} : vector<8x72xbf16>, vector<72x256xbf16>, vector<8x256xf32> -> vector<8x256xf32>
    %cst_15 = arith.constant dense<0.000000e+00> : vector<8xf32>
    %59 = vector.multi_reduction <add>, %58, %cst_15 [1] : vector<8x256xf32> to vector<8xf32>
    %60 = vector.shape_cast %59 : vector<8xf32> to vector<8x1xf32>
    %cst_16 = arith.constant 2.560000e+02 : f32
    %61 = vector.broadcast %cst_16 : f32 to vector<8x1xf32>
    %62 = arith.divf %60, %61 : vector<8x1xf32>
    %63 = vector.broadcast %62 : vector<8x1xf32> to vector<8x256xf32>
    %64 = arith.subf %58, %63 : vector<8x256xf32>
    %65 = arith.mulf %64, %64 : vector<8x256xf32>
    %cst_17 = arith.constant dense<0.000000e+00> : vector<8xf32>
    %66 = vector.multi_reduction <add>, %65, %cst_17 [1] : vector<8x256xf32> to vector<8xf32>
    %67 = vector.shape_cast %66 : vector<8xf32> to vector<8x1xf32>
    %cst_18 = arith.constant 2.560000e+02 : f32
    %68 = vector.broadcast %cst_18 : f32 to vector<8x1xf32>
    %69 = arith.divf %67, %68 : vector<8x1xf32>
    %c0_19 = arith.constant 0 : index
    %c0_20 = arith.constant 0 : index
    %70 = vector.load %arg5[%c0_19, %c0_20] : memref<8x1xf32, #tpu.memory_space<vmem>>, vector<8x1xf32>
    %cst_21 = arith.constant 9.99999974E-6 : f32
    %71 = vector.broadcast %cst_21 : f32 to vector<8x1xf32>
    %72 = arith.addf %69, %71 : vector<8x1xf32>
    %73 = math.rsqrt %72 : vector<8x1xf32>
    %74 = arith.mulf %70, %73 : vector<8x1xf32>
    %c0_22 = arith.constant 0 : index
    %c0_23 = arith.constant 0 : index
    %75 = vector.load %arg6[%c0_22, %c0_23] : memref<8x1xf32, #tpu.memory_space<vmem>>, vector<8x1xf32>
    %76 = arith.mulf %62, %74 : vector<8x1xf32>
    %77 = arith.subf %75, %76 : vector<8x1xf32>
    %78 = vector.broadcast %74 : vector<8x1xf32> to vector<8x256xf32>
    %79 = arith.mulf %58, %78 : vector<8x256xf32>
    %80 = vector.broadcast %77 : vector<8x1xf32> to vector<8x256xf32>
    %81 = arith.addf %79, %80 : vector<8x256xf32>
    %cst_24 = arith.constant 0.000000e+00 : f32
    %82 = vector.broadcast %cst_24 : f32 to vector<8x256xf32>
    %83 = arith.maximumf %81, %82 : vector<8x256xf32>
    %c4_i32_25 = arith.constant 4 : i32
    %84 = tpu.dynamic_rotate %83 by %c4_i32_25 dim 1 : vector<8x256xf32>, i32 -> vector<8x256xf32>
    %85 = vector.extract_strided_slice %1 {offsets = [0, 0], sizes = [1, 256], strides = [1, 1]} : vector<9x256xf32> to vector<1x256xf32>
    %86 = vector.broadcast %85 : vector<1x256xf32> to vector<8x256xf32>
    %87 = arith.mulf %84, %86 : vector<8x256xf32>
    %c3_i32_26 = arith.constant 3 : i32
    %88 = tpu.dynamic_rotate %83 by %c3_i32_26 dim 1 : vector<8x256xf32>, i32 -> vector<8x256xf32>
    %89 = vector.extract_strided_slice %1 {offsets = [1, 0], sizes = [1, 256], strides = [1, 1]} : vector<9x256xf32> to vector<1x256xf32>
    %90 = vector.broadcast %89 : vector<1x256xf32> to vector<8x256xf32>
    %91 = arith.mulf %88, %90 : vector<8x256xf32>
    %c2_i32_27 = arith.constant 2 : i32
    %92 = tpu.dynamic_rotate %83 by %c2_i32_27 dim 1 : vector<8x256xf32>, i32 -> vector<8x256xf32>
    %93 = vector.extract_strided_slice %1 {offsets = [2, 0], sizes = [1, 256], strides = [1, 1]} : vector<9x256xf32> to vector<1x256xf32>
    %94 = vector.broadcast %93 : vector<1x256xf32> to vector<8x256xf32>
    %95 = arith.mulf %92, %94 : vector<8x256xf32>
    %c1_i32_28 = arith.constant 1 : i32
    %96 = tpu.dynamic_rotate %83 by %c1_i32_28 dim 1 : vector<8x256xf32>, i32 -> vector<8x256xf32>
    %97 = vector.extract_strided_slice %1 {offsets = [3, 0], sizes = [1, 256], strides = [1, 1]} : vector<9x256xf32> to vector<1x256xf32>
    %98 = vector.broadcast %97 : vector<1x256xf32> to vector<8x256xf32>
    %99 = arith.mulf %96, %98 : vector<8x256xf32>
    %c255_i32_29 = arith.constant 255 : i32
    %100 = tpu.dynamic_rotate %83 by %c255_i32_29 dim 1 : vector<8x256xf32>, i32 -> vector<8x256xf32>
    %101 = vector.extract_strided_slice %1 {offsets = [5, 0], sizes = [1, 256], strides = [1, 1]} : vector<9x256xf32> to vector<1x256xf32>
    %102 = vector.broadcast %101 : vector<1x256xf32> to vector<8x256xf32>
    %103 = arith.mulf %100, %102 : vector<8x256xf32>
    %c254_i32_30 = arith.constant 254 : i32
    %104 = tpu.dynamic_rotate %83 by %c254_i32_30 dim 1 : vector<8x256xf32>, i32 -> vector<8x256xf32>
    %105 = vector.extract_strided_slice %1 {offsets = [6, 0], sizes = [1, 256], strides = [1, 1]} : vector<9x256xf32> to vector<1x256xf32>
    %106 = vector.broadcast %105 : vector<1x256xf32> to vector<8x256xf32>
    %107 = arith.mulf %104, %106 : vector<8x256xf32>
    %c253_i32_31 = arith.constant 253 : i32
    %108 = tpu.dynamic_rotate %83 by %c253_i32_31 dim 1 : vector<8x256xf32>, i32 -> vector<8x256xf32>
    %109 = vector.extract_strided_slice %1 {offsets = [7, 0], sizes = [1, 256], strides = [1, 1]} : vector<9x256xf32> to vector<1x256xf32>
    %110 = vector.broadcast %109 : vector<1x256xf32> to vector<8x256xf32>
    %111 = arith.mulf %108, %110 : vector<8x256xf32>
    %c252_i32_32 = arith.constant 252 : i32
    %112 = tpu.dynamic_rotate %83 by %c252_i32_32 dim 1 : vector<8x256xf32>, i32 -> vector<8x256xf32>
    %113 = vector.extract_strided_slice %1 {offsets = [8, 0], sizes = [1, 256], strides = [1, 1]} : vector<9x256xf32> to vector<1x256xf32>
    %114 = vector.broadcast %113 : vector<1x256xf32> to vector<8x256xf32>
    %115 = arith.mulf %112, %114 : vector<8x256xf32>
    %116 = tpu.concatenate %87, %91, %95, %99, %83, %103, %107, %111, %115 in 0 : vector<8x256xf32>, vector<8x256xf32>, vector<8x256xf32>, vector<8x256xf32>, vector<8x256xf32>, vector<8x256xf32>, vector<8x256xf32>, vector<8x256xf32>, vector<8x256xf32> -> vector<72x256xf32>
    %117 = arith.truncf %116 : vector<72x256xf32> to vector<72x256xbf16>
    %c0_33 = arith.constant 0 : index
    %c0_34 = arith.constant 0 : index
    %118 = vector.load %arg4[%c0_33, %c0_34] : memref<8x72xbf16, #tpu.memory_space<vmem>>, vector<8x72xbf16>
    %cst_35 = arith.constant dense<0.000000e+00> : vector<8x256xf32>
    %119 = tpu.matmul %118, %117, %cst_35 {dimension_numbers = #tpu.dot_dimension_numbers<[1], [0], [0], [1], [0, 0, 1, 1], [], []>} : vector<8x72xbf16>, vector<72x256xbf16>, vector<8x256xf32> -> vector<8x256xf32>
    %cst_36 = arith.constant dense<0.000000e+00> : vector<8xf32>
    %120 = vector.multi_reduction <add>, %119, %cst_36 [1] : vector<8x256xf32> to vector<8xf32>
    %121 = vector.shape_cast %120 : vector<8xf32> to vector<8x1xf32>
    %cst_37 = arith.constant 2.560000e+02 : f32
    %122 = vector.broadcast %cst_37 : f32 to vector<8x1xf32>
    %123 = arith.divf %121, %122 : vector<8x1xf32>
    %124 = vector.broadcast %123 : vector<8x1xf32> to vector<8x256xf32>
    %125 = arith.subf %119, %124 : vector<8x256xf32>
    %126 = arith.mulf %125, %125 : vector<8x256xf32>
    %cst_38 = arith.constant dense<0.000000e+00> : vector<8xf32>
    %127 = vector.multi_reduction <add>, %126, %cst_38 [1] : vector<8x256xf32> to vector<8xf32>
    %128 = vector.shape_cast %127 : vector<8xf32> to vector<8x1xf32>
    %cst_39 = arith.constant 2.560000e+02 : f32
    %129 = vector.broadcast %cst_39 : f32 to vector<8x1xf32>
    %130 = arith.divf %128, %129 : vector<8x1xf32>
    %c0_40 = arith.constant 0 : index
    %c0_41 = arith.constant 0 : index
    %131 = vector.load %arg7[%c0_40, %c0_41] : memref<8x1xf32, #tpu.memory_space<vmem>>, vector<8x1xf32>
    %cst_42 = arith.constant 9.99999974E-6 : f32
    %132 = vector.broadcast %cst_42 : f32 to vector<8x1xf32>
    %133 = arith.addf %130, %132 : vector<8x1xf32>
    %134 = math.rsqrt %133 : vector<8x1xf32>
    %135 = arith.mulf %131, %134 : vector<8x1xf32>
    %c0_43 = arith.constant 0 : index
    %c0_44 = arith.constant 0 : index
    %136 = vector.load %arg8[%c0_43, %c0_44] : memref<8x1xf32, #tpu.memory_space<vmem>>, vector<8x1xf32>
    %137 = arith.mulf %123, %135 : vector<8x1xf32>
    %138 = arith.subf %136, %137 : vector<8x1xf32>
    %139 = vector.broadcast %135 : vector<8x1xf32> to vector<8x256xf32>
    %140 = arith.mulf %119, %139 : vector<8x256xf32>
    %141 = vector.broadcast %138 : vector<8x1xf32> to vector<8x256xf32>
    %142 = arith.addf %140, %141 : vector<8x256xf32>
    %cst_45 = arith.constant 0.000000e+00 : f32
    %143 = vector.broadcast %cst_45 : f32 to vector<8x256xf32>
    %144 = arith.maximumf %142, %143 : vector<8x256xf32>
    %145 = vector.extract_strided_slice %144 {offsets = [0, 0], sizes = [8, 128], strides = [1, 1]} : vector<8x256xf32> to vector<8x128xf32>
    %c0_46 = arith.constant 0 : index
    %c0_47 = arith.constant 0 : index
    %c0_48 = arith.constant 0 : index
    %146 = vector.load %arg9[%c0_46, %c0_47, %c0_48] : memref<2x8x128xf32, #tpu.memory_space<vmem>>, vector<1x8x128xf32>
    %147 = vector.shape_cast %146 : vector<1x8x128xf32> to vector<8x128xf32>
    %148 = vector.shape_cast %145 : vector<8x128xf32> to vector<1x8x128xf32>
    tpu.vector_store %arg9[%c0_46, %c0_47, %c0_48], %148 {strides = array<i32>} : memref<2x8x128xf32, #tpu.memory_space<vmem>>, vector<1x8x128xf32>,
    %149 = vector.extract_strided_slice %144 {offsets = [0, 128], sizes = [8, 128], strides = [1, 1]} : vector<8x256xf32> to vector<8x128xf32>
    %c1_49 = arith.constant 1 : index
    %c0_50 = arith.constant 0 : index
    %c0_51 = arith.constant 0 : index
    %150 = vector.load %arg9[%c1_49, %c0_50, %c0_51] : memref<2x8x128xf32, #tpu.memory_space<vmem>>, vector<1x8x128xf32>
    %151 = vector.shape_cast %150 : vector<1x8x128xf32> to vector<8x128xf32>
    %152 = vector.shape_cast %149 : vector<8x128xf32> to vector<1x8x128xf32>
    tpu.vector_store %arg9[%c1_49, %c0_50, %c0_51], %152 {strides = array<i32>} : memref<2x8x128xf32, #tpu.memory_space<vmem>>, vector<1x8x128xf32>,
    return
  }
}

</mosaic_0001>

<bundles_post_ra>
// kernel: tpu_custom_call.1
= control target key start
LH: loop header
LB: loop body
LE: loop exit
PB: predicated region body
PF: predicated region fallthrough
CT: control target
= control target key end

     0   :  { %14 = vsyncpa [#allocation3], 0  ;;  %s1918_s0 = inlined_call_operand.hbm [shape: f32[2,8,512], index: 0, kind: input, shape index: {}]   ;;  %s1919_s1 = inlined_call_operand.hbm [shape: bf16[512,128], index: 1, kind: input, shape index: {}]   ;;  %s1920_s2 = inlined_call_operand.vmem [shape: f32[9,256], index: 2, kind: input, shape index: {}]   ;;  %s1921_s3 = inlined_call_operand.vmem [shape: bf16[8,72], index: 3, kind: input, shape index: {}]   ;;  %s1922_s4 = inlined_call_operand.vmem [shape: bf16[8,72], index: 4, kind: input, shape index: {}]   ;;  %s1923_s5 = inlined_call_operand.vmem [shape: f32[8,1], index: 5, kind: input, shape index: {}]   ;;  %s1924_s6 = inlined_call_operand.vmem [shape: f32[8,1], index: 6, kind: input, shape index: {}]   ;;  %s1925_s7 = inlined_call_operand.vmem [shape: f32[8,1], index: 7, kind: input, shape index: {}]   ;;  %s1926_s8 = inlined_call_operand.vmem [shape: f32[8,1], index: 8, kind: input, shape index: {}]   ;;  %s1927_s9 = inlined_call_operand.hbm [shape: f32[2,8,128], index: 9, kind: output, shape index: {}]  }
   0x1   :  { %15 = vsyncpa [#allocation6], 0 }
   0x2   :  { %16 = vsyncpa [#allocation4], 0  ;;  %s1326_s30 = smov [#allocation2]   ;;  %s1254_s13 = scalar_lea.hbm %s1918_s0, 1024 }
   0x3   :  { %s22_s10 = sshll.u32 %s1326_s30, 4  ;;  %p1255_p0 = scmp.ne.s32.totalorder %s1918_s0, %s1254_s13  ;;  %s23_s10 = int_to_ptr.vmem [resolvable:$true] %s22_s10 }
   0x4   :  { %p1258_p1 = scmp.lt.u32.totalorder %s1254_s13, %s1918_s0 }
   0x6   :  { %p1260_p2 = pnand %p1258_p1, %p1255_p0 }
   0x8   :  { %1263 = shalt.err (!%p1260_p2)
}
   0x9   :  { %s1264_s18 = scalar_lea.vmem %s23_s10, 1024  ;;  %p1269_p4 = scmp.lt.s32.totalorder %s23_s10, %s23_s10 }
   0xa   :  { %p1265_p3 = scmp.ne.s32.totalorder %s23_s10, %s1264_s18  ;;  %p1270_p5 = scmp.lt.s32.totalorder %s1264_s18, %s1264_s18 }
   0xc   :  { %p1271_p6 = por %p1270_p5, %p1269_p4 }
   0xe   :  { %p1272_p7 = pnand %p1271_p6, %p1265_p3 }
  0x10   :  { %1275 = shalt.err (!%p1272_p7)
}
  0x11   :  { %s1327_s19 = smov 512   ;;  %s1328_s20 = smov 32  }
  0x12   :  { %28 = dma.hbm_to_vmem [thread:$0]  %s1918_s0, 1024, %s23_s10, [#allocation3], %s1327_s19, %s1327_s19, %s1328_s20  }
  0x13   :  { %s1329_s23 = smov [#allocation5]   ;;  %s1276_s27 = scalar_lea.hbm %s1919_s1, 4096 }
  0x14   :  { %s34_s24 = sshll.u32 %s1329_s23, 4  ;;  %p1277_p8 = scmp.ne.s32.totalorder %s1919_s1, %s1276_s27  ;;  %s35_s24 = int_to_ptr.vmem [resolvable:$true] %s34_s24 }
  0x15   :  { %p1280_p9 = scmp.lt.u32.totalorder %s1276_s27, %s1919_s1 }
  0x17   :  { %p1282_p10 = pnand %p1280_p9, %p1277_p8 }
  0x19   :  { %1285 = shalt.err (!%p1282_p10)
}
  0x1a   :  { %s1286_s12 = scalar_lea.vmem %s35_s24, 4096  ;;  %p1291_p12 = scmp.lt.s32.totalorder %s35_s24, %s35_s24 }
  0x1b   :  { %p1287_p11 = scmp.ne.s32.totalorder %s35_s24, %s1286_s12  ;;  %p1292_p13 = scmp.lt.s32.totalorder %s1286_s12, %s1286_s12 }
  0x1d   :  { %p1293_p0 = por %p1292_p13, %p1291_p12 }
  0x1f   :  { %p1294_p1 = pnand %p1293_p0, %p1287_p11 }
  0x21   :  { %1297 = shalt.err (!%p1294_p1)
}
  0x22   :  { %s1330_s0 = smov 64   ;;  %s1331_s10 = smov 4  }
  0x23   :  { %40 = dma.hbm_to_vmem [thread:$0]  %s1919_s1, 4096, %s35_s24, [#allocation6], %s1330_s0, %s1330_s0, %s1331_s10  }
  0x24   :  { %1320 = dma.done.wait [#allocation3], 1024  }
  0x25   :  { %1321 = vsyncadd [#allocation3], 4294966272 }
  0x26   :  { %1322 = dma.done.wait [#allocation6], 4096  }
  0x27   :  { %1323 = vsyncadd [#allocation6], 4294963200  ;;  %v1418_v0 = vld [vmem:[#allocation2] sm:$0xff]  ;;  %v1420_v1 = vld [vmem:[#allocation2 + $0x8] sm:$0xff]  ;;  %s1332_s15 = smov 126   ;;  %s1333_s16 = smov 127   ;;  %v142_v44 = vlaneseq }
  0x28   :  { %v1422_v2 = vld [vmem:[#allocation2 + $0x10] sm:$0xff]  ;;  %v1166_v3 = vpack.i.bf16 %v1420_v1, %v1418_v0  ;;  %v1426_v4 = vld [vmem:[#allocation2 + $0x18] sm:$0xff]  ;;  %v1432_v6 = vld [vmem:[#allocation5 + $0x40] sm:$0xff]   ;;  %s1334_s1 = smov 125   ;;  %s1335_s17 = smov 3   ;;  %vm748_vm8 = vcmask 1043456  }
  0x29   :  { %v1171_v5 = vpack.i.bf16 %v1426_v4, %v1422_v2  ;;  %v1434_v7 = vld [vmem:[#allocation5 + $0xc0] sm:$0xff]   ;;  %1051 = vmatprep.subr.bf16.mxu0 %v1432_v6  ;;  %v1439_v9 = vld [vmem:[#allocation2 + $0x30] sm:$0xff]  ;;  %v1441_v10 = vld [vmem:[#allocation2 + $0x38] sm:$0xff]  ;;  %v1553_v45 = vand.u32 127, %v142_v44  ;;  %s1336_s18 = smov 2   ;;  %s1337_s19 = smov 1  }
  0x2a   :  { %1167 = vrot.lane.b32.xlu1 %v1166_v3, %s1332_s15  ;;  %1157 = vrot.lane.b32.xlu0 %v1166_v3, %s1333_s16  ;;  %v1437_v8 = vld [vmem:[#allocation5] sm:$0xff]   ;;  %v1445_v12 = vld [vmem:[#allocation2 + $0x28] sm:$0xff]  ;;  %v1191_v18 = vpack.i.bf16 %v1441_v10, %v1439_v9  ;;  %v1470_v20 = vld [vmem:[#allocation5 + $0x50] sm:$0xff]   ;;  %s1338_s20 = smov 124   ;;  %vm744_vm9 = vcmask 588800   ;;  %s1340_s14 = smov [#allocation7]  }
  0x2b   :  { %v1443_v11 = vld [vmem:[#allocation2 + $0x20] sm:$0xff]  ;;  %1073 = vmatprep.subr.bf16.mxu1 %v1434_v7  ;;  %v1452_v14 = vld [vmem:[#allocation5 + $0x48] sm:$0xff]   ;;  %1052 = vmatpush3.bf16.msra.mxu0 %v1437_v8  ;;  %v1474_v21 = vld [vmem:[#allocation5 + $0xd0] sm:$0xff]   ;;  %vm144_vm0 = vcmp.lt.s32.totalorder %v1553_v45, 127  ;;  %vm161_vm1 = vcmp.lt.s32.totalorder %v1553_v45, 126  ;;  %vm178_vm2 = vcmp.lt.s32.totalorder %v1553_v45, 125 }
  0x2c   :  { %v1448_v13 = vld [vmem:[#allocation5 + $0x80] sm:$0xff]   ;;  %v1456_v15 = vld [vmem:[#allocation5 + $0xc8] sm:$0xff]   ;;  %1053 = vmatprep.subr.bf16.mxu0 %v1452_v14  ;;  %v1186_v19 = vpack.i.bf16 %v1445_v12, %v1443_v11  ;;  %v1477_v22 = vld [vmem:[#allocation5 + $0x10] sm:$0xff]   ;;  %vm604_vm3 = vcmp.lt.s32.totalorder %v1553_v45, 4  ;;  %vm621_vm4 = vcmp.lt.s32.totalorder %v1553_v45, 3  ;;  %vm638_vm5 = vcmp.lt.s32.totalorder %v1553_v45, 2 }
  0x2d   :  { %1074 = vmatpush3.bf16.msra.mxu1 %v1448_v13  ;;  %v1459_v16 = vld [vmem:[#allocation5 + $0x8] sm:$0xff]   ;;  %v1480_v23 = vld [vmem:[#allocation5 + $0x90] sm:$0xff]   ;;  %v1484_v24 = vld [vmem:[#allocation5 + $0x58] sm:$0xff]   ;;  %vm655_vm6 = vcmp.lt.s32.totalorder %v1553_v45, 1  ;;  %vm720_vm7 = vcmp.lt.s32.totalorder %v1553_v45, 124 }
  0x2e   :  { %1172 = vrot.lane.b32.xlu1 %v1171_v5, %s1332_s15  ;;  %1162 = vrot.lane.b32.xlu0 %v1171_v5, %s1333_s16  ;;  %v1462_v17 = vld [vmem:[#allocation5 + $0x88] sm:$0xff]   ;;  %v1488_v25 = vld [vmem:[#allocation5 + $0xd8] sm:$0xff]   ;;  %v1498_v28 = vld [vmem:[#allocation5 + $0x60] sm:$0xff]  }
  0x2f   :  { %1075 = vmatprep.subr.bf16.mxu1 %v1456_v15  ;;  %1054 = vmatpush3.bf16.msra.mxu0 %v1459_v16  ;;  %v1491_v26 = vld [vmem:[#allocation5 + $0x18] sm:$0xff]   ;;  %v1502_v29 = vld [vmem:[#allocation5 + $0xe0] sm:$0xff]   ;;  %v1512_v32 = vld [vmem:[#allocation5 + $0x68] sm:$0xff]  }
  0x30   :  { %1055 = vmatprep.subr.bf16.mxu0 %v1470_v20  ;;  %v1494_v27 = vld [vmem:[#allocation5 + $0x98] sm:$0xff]   ;;  %v1505_v30 = vld [vmem:[#allocation5 + $0x20] sm:$0xff]   ;;  %v1516_v33 = vld [vmem:[#allocation5 + $0xe8] sm:$0xff]  }
  0x31   :  { %1076 = vmatpush3.bf16.msra.mxu1 %v1462_v17  ;;  %v1508_v31 = vld [vmem:[#allocation5 + $0xa0] sm:$0xff]   ;;  %v1519_v34 = vld [vmem:[#allocation5 + $0x28] sm:$0xff]   ;;  %v1524_v36 = vld [vmem:[#allocation5 + $0x70] sm:$0xff]  }
  0x32   :  { %1182 = vrot.lane.b32.xlu1 %v1171_v5, %s1334_s1  ;;  %1177 = vrot.lane.b32.xlu0 %v1166_v3, %s1334_s1  ;;  %v1522_v35 = vld [vmem:[#allocation5 + $0xa8] sm:$0xff]   ;;  %v1528_v37 = vld [vmem:[#allocation5 + $0xf0] sm:$0xff]   ;;  %v1536_v40 = vld [vmem:[#allocation5 + $0x78] sm:$0xff]  }
  0x33   :  { %1077 = vmatprep.subr.bf16.mxu1 %v1474_v21  ;;  %1056 = vmatpush3.bf16.msra.mxu0 %v1477_v22  ;;  %v1531_v38 = vld [vmem:[#allocation5 + $0x30] sm:$0xff]   ;;  %v1540_v41 = vld [vmem:[#allocation5 + $0xf8] sm:$0xff]  }
  0x34   :  { %1057 = vmatprep.subr.bf16.mxu0 %v1484_v24  ;;  %v1534_v39 = vld [vmem:[#allocation5 + $0xb0] sm:$0xff]   ;;  %v1543_v42 = vld [vmem:[#allocation5 + $0x38] sm:$0xff]  }
  0x35   :  { %1078 = vmatpush3.bf16.msra.mxu1 %v1480_v23  ;;  %v1546_v43 = vld [vmem:[#allocation5 + $0xb8] sm:$0xff]  }
  0x36   :  { %1192 = vrot.lane.b32.xlu1 %v1191_v18, %s1333_s16  ;;  %1187 = vrot.lane.b32.xlu0 %v1186_v19, %s1333_s16 }
  0x37   :  { %1079 = vmatprep.subr.bf16.mxu1 %v1488_v25  ;;  %1058 = vmatpush3.bf16.msra.mxu0 %v1491_v26 }
  0x38   :  { %1059 = vmatprep.subr.bf16.mxu0 %v1498_v28 }
  0x39   :  { %1080 = vmatpush3.bf16.msra.mxu1 %v1494_v27 }
  0x3a   :  { %1202 = vrot.lane.b32.xlu1 %v1191_v18, %s1332_s15  ;;  %1197 = vrot.lane.b32.xlu0 %v1186_v19, %s1332_s15 }
  0x3b   :  { %1081 = vmatprep.subr.bf16.mxu1 %v1502_v29  ;;  %1060 = vmatpush3.bf16.msra.mxu0 %v1505_v30 }
  0x3c   :  { %1061 = vmatprep.subr.bf16.mxu0 %v1512_v32 }
  0x3d   :  { %1082 = vmatpush3.bf16.msra.mxu1 %v1508_v31 }
  0x3e   :  { %1212 = vrot.lane.b32.xlu1 %v1191_v18, %s1334_s1  ;;  %1207 = vrot.lane.b32.xlu0 %v1186_v19, %s1334_s1 }
  0x3f   :  { %1083 = vmatprep.subr.bf16.mxu1 %v1516_v33  ;;  %1062 = vmatpush3.bf16.msra.mxu0 %v1519_v34 }
  0x40   :  { %1063 = vmatprep.subr.bf16.mxu0 %v1524_v36 }
  0x41   :  { %1084 = vmatpush3.bf16.msra.mxu1 %v1522_v35 }
  0x42   :  { %1085 = vmatprep.subr.bf16.mxu1 %v1528_v37 }
  0x43   :  { %1064 = vmatpush3.bf16.msra.mxu0 %v1531_v38 }
  0x44   :  { %1065 = vmatprep.subr.bf16.mxu0 %v1536_v40 }
  0x45   :  { %1086 = vmatpush3.bf16.msra.mxu1 %v1534_v39 }
  0x46   :  { %1087 = vmatprep.subr.bf16.mxu1 %v1540_v41 }
  0x47   :  { %1066 = vmatpush3.bf16.msra.mxu0 %v1543_v42 }
  0x48   :  { %1095 = vmatprep.subr.bf16.mxu0 %v1432_v6 }
  0x49   :  { %1088 = vmatpush3.bf16.msra.mxu1 %v1546_v43 }
  0x4a   :  { %1117 = vmatprep.subr.bf16.mxu1 %v1434_v7 }
  0x9c   :  { %v1168_v46 = vpop.permute.xlu1 %1167  ;;  %v1158_v47 = vpop.permute.xlu0 %1157 }
  0x9d   :  { %v1160_v48 = vunpack.i.h.bf16 %v1158_v47  ;;  %v1159_v49 = vunpack.i.l.bf16 %v1158_v47  ;;  %v1170_v50 = vunpack.i.h.bf16 %v1168_v46  ;;  %v1169_v51 = vunpack.i.l.bf16 %v1168_v46 }
  0x9f   :  { %v147_v52 = vsel %vm144_vm0, %v1159_v49, %v1160_v48  ;;  %v164_v60 = vsel %vm161_vm1, %v1169_v51, %v1170_v50 }
  0xa0   :  { %v149_v53 = vmax.f32 %v1418_v0, %v147_v52  ;;  %v1173_v54 = vpop.permute.xlu1 %1172  ;;  %v1163_v55 = vpop.permute.xlu0 %1162 }
  0xa1   :  { %v1175_v56 = vunpack.i.h.bf16 %v1173_v54  ;;  %v1174_v57 = vunpack.i.l.bf16 %v1173_v54  ;;  %v1165_v58 = vunpack.i.h.bf16 %v1163_v55  ;;  %v1164_v59 = vunpack.i.l.bf16 %v1163_v55 }
  0xa2   :  { %v166_v0 = vmax.f32 %v149_v53, %v164_v60 }
  0xa3   :  { %v162_v61 = vsel %vm161_vm1, %v1174_v57, %v1175_v56  ;;  %v145_v62 = vsel %vm144_vm0, %v1164_v59, %v1165_v58  ;;  %v146_v63 = vsel %vm144_vm0, %v1160_v48, %v1164_v59  ;;  %v163_v18 = vsel %vm161_vm1, %v1170_v50, %v1174_v57 }
  0xa4   :  { %v151_v3 = vmax.f32 %v1422_v2, %v145_v62  ;;  %v1183_v5 = vpop.permute.xlu1 %1182  ;;  %v1178_v6 = vpop.permute.xlu0 %1177  ;;  %v150_v7 = vmax.f32 %v1420_v1, %v146_v63  ;;  %v148_v19 = vsel %vm144_vm0, %v1165_v58, %v1159_v49  ;;  %v165_v2 = vsel %vm161_vm1, %v1175_v56, %v1169_v51 }
  0xa5   :  { %v1185_v46 = vunpack.i.h.bf16 %v1183_v5  ;;  %v1184_v47 = vunpack.i.l.bf16 %v1183_v5  ;;  %v1180_v52 = vunpack.i.h.bf16 %v1178_v6  ;;  %v1179_v54 = vunpack.i.l.bf16 %v1178_v6 }
  0xa6   :  { %v167_v55 = vmax.f32 %v150_v7, %v163_v18  ;;  %v152_v48 = vmax.f32 %v1426_v4, %v148_v19  ;;  %v168_v53 = vmax.f32 %v151_v3, %v162_v61 }
  0xa7   :  { %v180_v1 = vsel %vm178_vm2, %v1180_v52, %v1184_v47  ;;  %v182_v50 = vsel %vm178_vm2, %v1185_v46, %v1179_v54  ;;  %v181_v49 = vsel %vm178_vm2, %v1179_v54, %v1180_v52  ;;  %v179_v57 = vsel %vm178_vm2, %v1184_v47, %v1185_v46 }
  0xa8   :  { %v184_v58 = vmax.f32 %v167_v55, %v180_v1  ;;  %v169_v59 = vmax.f32 %v152_v48, %v165_v2  ;;  %v183_v60 = vmax.f32 %v166_v0, %v181_v49  ;;  %v185_v4 = vmax.f32 %v168_v53, %v179_v57  ;;  %v1193_v62 = vpop.permute.xlu1 %1192  ;;  %v1188_v63 = vpop.permute.xlu0 %1187 }
  0xa9   :  { %v1195_v51 = vunpack.i.h.bf16 %v1193_v62  ;;  %v1194_v56 = vunpack.i.l.bf16 %v1193_v62  ;;  %v1190_v61 = vunpack.i.h.bf16 %v1188_v63  ;;  %v1189_v3 = vunpack.i.l.bf16 %v1188_v63 }
  0xaa   :  { %v188_v5 = vpack.c.bf16 %v184_v58, %v184_v58  ;;  %v186_v6 = vmax.f32 %v169_v59, %v182_v50  ;;  %v187_v7 = vpack.c.bf16 %v183_v60, %v183_v60  ;;  %v189_v18 = vpack.c.bf16 %v185_v4, %v185_v4 }
  0xab   :  { %v477_v19 = vsel %vm144_vm0, %v1190_v61, %v1194_v56  ;;  %v479_v46 = vsel %vm144_vm0, %v1195_v51, %v1189_v3 }
  0xac   :  { %415 = vmatprep.mubr.bf16.mxu0 %v188_v5  ;;  %v190_v47 = vpack.c.bf16 %v186_v6, %v186_v6  ;;  %v481_v0 = vmax.f32 %v1445_v12, %v477_v19  ;;  %v1203_v52 = vpop.permute.xlu1 %1202  ;;  %v1198_v54 = vpop.permute.xlu0 %1197  ;;  %v483_v53 = vmax.f32 %v1441_v10, %v479_v46  ;;  %v1339_v46 = vmov 0  }
  0xad   :  { %416 = vmatmul.mubr.bf16.vlgmr.msra.gmra.mrb[0].mxu0 %v187_v7  ;;  %v1205_v55 = vunpack.i.h.bf16 %v1203_v52  ;;  %v1204_v48 = vunpack.i.l.bf16 %v1203_v52  ;;  %v1200_v2 = vunpack.i.h.bf16 %v1198_v54  ;;  %v1199_v1 = vunpack.i.l.bf16 %v1198_v54  ;;  %1216 = vset.pattern.permute.xlu0 %v1339_v46 }
  0xae   :  { %455 = vmatprep.mubr.bf16.mxu1 %v190_v47  ;;  %1096 = vmatpush3.bf16.msra.mxu0 %v1437_v8  ;;  %v1681_v52 = vshrl.u32 %v142_v44, 7 }
  0xaf   :  { %456 = vmatmul.mubr.bf16.vlgmr.msra.gmra.mrb[0].mxu1 %v189_v18  ;;  %1097 = vmatprep.subr.bf16.mxu0 %v1452_v14  ;;  %v493_v50 = vsel %vm161_vm1, %v1200_v2, %v1204_v48  ;;  %v495_v12 = vsel %vm161_vm1, %v1205_v55, %v1199_v1 }
  0xb0   :  { %1118 = vmatpush3.bf16.msra.mxu1 %v1448_v13  ;;  %v1213_v49 = vpop.permute.xlu1 %1212  ;;  %v1208_v57 = vpop.permute.xlu0 %1207  ;;  %v497_v58 = vmax.f32 %v481_v0, %v493_v50  ;;  %v499_v14 = vmax.f32 %v483_v53, %v495_v12  ;;  %1217 = vset.pattern.permute.xlu1 %v1339_v46  ;;  %v609_v54 = vsub.s32 0, %v1681_v52  ;;  %v1693_v53 = vld [vmem:[%s1920_s2 + $0x8] sm:$0xff] }
  0xb1   :  { %1119 = vmatprep.subr.bf16.mxu1 %v1456_v15  ;;  %v1215_v8 = vunpack.i.h.bf16 %v1213_v49  ;;  %v1214_v59 = vunpack.i.l.bf16 %v1213_v49  ;;  %v1210_v10 = vunpack.i.h.bf16 %v1208_v57  ;;  %v1209_v60 = vunpack.i.l.bf16 %v1208_v57 }
  0xb2   :  { %1098 = vmatpush3.bf16.msra.mxu0 %v1459_v16  ;;  %v1700_v50 = vrot.slane %v1693_v53, %v609_v54 }
  0xb3   :  { %1099 = vmatprep.subr.bf16.mxu0 %v1470_v20  ;;  %v509_v13 = vsel %vm178_vm2, %v1210_v10, %v1214_v59  ;;  %v511_v62 = vsel %vm178_vm2, %v1215_v8, %v1209_v60  ;;  %v476_v20 = vsel %vm144_vm0, %v1194_v56, %v1195_v51 }
  0xb4   :  { %1120 = vmatpush3.bf16.msra.mxu1 %v1462_v17  ;;  %v513_v4 = vmax.f32 %v497_v58, %v509_v13  ;;  %v515_v15 = vmax.f32 %v499_v14, %v511_v62  ;;  %v478_v17 = vsel %vm144_vm0, %v1189_v3, %v1190_v61  ;;  %v643_v14 = vsub.s32 2, %v1681_v52 }
  0xb5   :  { %1121 = vmatprep.subr.bf16.mxu1 %v1474_v21  ;;  %v480_v21 = vmax.f32 %v1443_v11, %v478_v17  ;;  %v510_v11 = vsel %vm178_vm2, %v1209_v60, %v1210_v10  ;;  %v660_v13 = vsub.s32 3, %v1681_v52 }
  0xb6   :  { %1100 = vmatpush3.bf16.msra.mxu0 %v1477_v22  ;;  %v517_v63 = vpack.c.bf16 %v513_v4, %v513_v4  ;;  %v519_v16 = vpack.c.bf16 %v515_v15, %v515_v15  ;;  %v494_v22 = vsel %vm161_vm1, %v1199_v1, %v1200_v2  ;;  %v626_v2 = vsub.s32 1, %v1681_v52 }
  0xb7   :  { %1101 = vmatprep.subr.bf16.mxu0 %v1484_v24  ;;  %v492_v24 = vsel %vm161_vm1, %v1204_v48, %v1205_v55  ;;  %v1687_v48 = vld [vmem:[%s1920_s2] sm:$0xff] }
  0xb8   :  { %1122 = vmatpush3.bf16.msra.mxu1 %v1480_v23  ;;  %552 = vmatprep.mubr.bf16.mxu0 %v517_v63  ;;  %v482_v23 = vmax.f32 %v1439_v9, %v476_v20  ;;  %v508_v9 = vsel %vm178_vm2, %v1214_v59, %v1215_v8  ;;  %v1697_v44 = vrot.slane %v1687_v48, %v609_v54 }
  0xb9   :  { %1123 = vmatprep.subr.bf16.mxu1 %v1488_v25  ;;  %592 = vmatprep.mubr.bf16.mxu1 %v519_v16  ;;  %v496_v25 = vmax.f32 %v480_v21, %v494_v22  ;;  %v1704_v12 = vrot.slane %v1687_v48, %v626_v2  ;;  %v1707_v49 = vrot.slane %v1693_v53, %v626_v2  ;;  %v676_v22 = vsub.s32 5, %v1681_v52 }
  0xba   :  { %1102 = vmatpush3.bf16.msra.mxu0 %v1491_v26  ;;  %v498_v26 = vmax.f32 %v482_v23, %v492_v24  ;;  %v1725_v21 = vrot.slane %v1687_v48, %v643_v14  ;;  %v1729_v24 = vrot.slane %v1693_v53, %v643_v14 }
  0xbb   :  { %1103 = vmatprep.subr.bf16.mxu0 %v1498_v28 }
  0xbc   :  { %1124 = vmatpush3.bf16.msra.mxu1 %v1494_v27  ;;  %v512_v27 = vmax.f32 %v496_v25, %v510_v11  ;;  %v514_v28 = vmax.f32 %v498_v26, %v508_v9  ;;  %v1733_v25 = vrot.slane %v1687_v48, %v660_v13  ;;  %v1736_v11 = vrot.slane %v1693_v53, %v660_v13 }
  0xbd   :  { %1125 = vmatprep.subr.bf16.mxu1 %v1502_v29 }
  0xbe   :  { %1104 = vmatpush3.bf16.msra.mxu0 %v1505_v30  ;;  %v516_v29 = vpack.c.bf16 %v512_v27, %v512_v27  ;;  %v518_v30 = vpack.c.bf16 %v514_v28, %v514_v28 }
  0xbf   :  { %1105 = vmatprep.subr.bf16.mxu0 %v1512_v32 }
  0xc0   :  { %1126 = vmatpush3.bf16.msra.mxu1 %v1508_v31 }
  0xc1   :  { %1127 = vmatprep.subr.bf16.mxu1 %v1516_v33 }
  0xc2   :  { %1106 = vmatpush3.bf16.msra.mxu0 %v1519_v34 }
  0xc3   :  { %1107 = vmatprep.subr.bf16.mxu0 %v1524_v36 }
  0xc4   :  { %1128 = vmatpush3.bf16.msra.mxu1 %v1522_v35 }
  0xc5   :  { %1129 = vmatprep.subr.bf16.mxu1 %v1528_v37 }
  0xc6   :  { %1108 = vmatpush3.bf16.msra.mxu0 %v1531_v38 }
  0xc7   :  { %1109 = vmatprep.subr.bf16.mxu0 %v1536_v40 }
  0xc8   :  { %1130 = vmatpush3.bf16.msra.mxu1 %v1534_v39 }
  0xc9   :  { %1131 = vmatprep.subr.bf16.mxu1 %v1540_v41 }
  0xca   :  { %1110 = vmatpush3.bf16.msra.mxu0 %v1543_v42 }
  0xcc   :  { %1132 = vmatpush3.bf16.msra.mxu1 %v1546_v43 }
  0xcd   :  { %553 = vmatmul.mubr.bf16.vlgmr.msra.gmra.mrb[4].mxu0 %v516_v29 }
  0xce   :  { %787 = vmatprep.mubr.bf16.mxu0 %v1339_v46 }
  0xcf   :  { %593 = vmatmul.mubr.bf16.vlgmr.msra.gmra.mrb[4].mxu1 %v518_v30  ;;  %v1747_v30 = vrot.slane %v1687_v48, %v676_v22 }
  0xd0   :  { %948 = vmatprep.mubr.bf16.mxu1 %v1339_v46 }
 0x180   :  { %v1067_v31 = vpop.f32.mrb[0].mxu0 }
 0x181   :  { %v1068_v32 = vpop.f32.mrb[1].mxu0 }
 0x182   :  { %v1089_v33 = vpop.f32.mrb[0].mxu1  ;;  %v1069_v34 = vadd.f32 %v1068_v32, %v1067_v31  ;;  %v1070_v35 = vpop.f32.mrb[2].mxu0  ;;  %v1750_v31 = vrot.slane %v1693_v53, %v676_v22 }
 0x183   :  { %v1090_v36 = vpop.f32.mrb[1].mxu1  ;;  %v1071_v37 = vpop.f32.mrb[3].mxu0 }
 0x184   :  { %v1091_v38 = vadd.f32 %v1090_v36, %v1089_v33  ;;  %v1092_v39 = vpop.f32.mrb[2].mxu1 }
 0x185   :  { %v1093_v40 = vpop.f32.mrb[3].mxu1 }
 0x186   :  { %v1644_v51 = vadd.f32 %v1091_v38, %v1069_v34 }
 0x188   :  { %600 = vrot.lane.b32.xlu0 %v1644_v51, %s1331_s10 }
 0x18c   :  { %617 = vrot.lane.b32.xlu0 %v1644_v51, %s1335_s17 }
 0x190   :  { %634 = vrot.lane.b32.xlu0 %v1644_v51, %s1336_s18 }
 0x194   :  { %651 = vrot.lane.b32.xlu0 %v1644_v51, %s1337_s19 }
 0x198   :  { %668 = vrot.lane.b32.xlu0 %v1644_v51, %s1333_s16 }
 0x19c   :  { %684 = vrot.lane.b32.xlu0 %v1644_v51, %s1332_s15 }
 0x1a0   :  { %700 = vrot.lane.b32.xlu0 %v1644_v51, %s1334_s1  ;;  %v1111_v41 = vpop.f32.mrb[4].mxu0 }
 0x1a1   :  { %v1112_v42 = vpop.f32.mrb[5].mxu0 }
 0x1a2   :  { %v1133_v43 = vpop.f32.mrb[4].mxu1  ;;  %v1113_v56 = vadd.f32 %v1112_v42, %v1111_v41  ;;  %v1114_v61 = vpop.f32.mrb[6].mxu0 }
 0x1a3   :  { %v1134_v3 = vpop.f32.mrb[5].mxu1  ;;  %v1115_v5 = vpop.f32.mrb[7].mxu0  ;;  %v708_v61 = vsub.s32 7, %v1681_v52 }
 0x1a4   :  { %v1135_v6 = vadd.f32 %v1134_v3, %v1133_v43  ;;  %v1136_v7 = vpop.f32.mrb[6].mxu1  ;;  %716 = vrot.lane.b32.xlu0 %v1644_v51, %s1338_s20 }
 0x1a5   :  { %v1137_v18 = vpop.f32.mrb[7].mxu1 }
 0x1a6   :  { %v1662_v19 = vadd.f32 %v1135_v6, %v1113_v56  ;;  %v692_v56 = vsub.s32 6, %v1681_v52 }
 0x1a8   :  { %602 = vrot.lane.b32.xlu1 %v1662_v19, %s1331_s10  ;;  %v1767_v18 = vrot.slane %v1687_v48, %v692_v56  ;;  %v1770_v46 = vrot.slane %v1693_v53, %v692_v56 }
 0x1ac   :  { %619 = vrot.lane.b32.xlu1 %v1662_v19, %s1335_s17 }
 0x1b0   :  { %636 = vrot.lane.b32.xlu1 %v1662_v19, %s1336_s18 }
 0x1b4   :  { %653 = vrot.lane.b32.xlu1 %v1662_v19, %s1337_s19 }
 0x1b8   :  { %670 = vrot.lane.b32.xlu1 %v1662_v19, %s1333_s16 }
 0x1bc   :  { %686 = vrot.lane.b32.xlu1 %v1662_v19, %s1332_s15 }
 0x1c0   :  { %702 = vrot.lane.b32.xlu1 %v1662_v19, %s1334_s1 }
 0x1c4   :  { %718 = vrot.lane.b32.xlu1 %v1662_v19, %s1338_s20 }
 0x1fa   :  { %v601_v47 = vpop.permute.xlu0 %600 }
 0x1fe   :  { %v618_v0 = vpop.permute.xlu0 %617 }
 0x202   :  { %v635_v55 = vpop.permute.xlu0 %634 }
 0x206   :  { %v652_v8 = vpop.permute.xlu0 %651 }
 0x20a   :  { %v669_v23 = vpop.permute.xlu0 %668 }
 0x20e   :  { %v685_v36 = vpop.permute.xlu0 %684 }
 0x212   :  { %v701_v7 = vpop.permute.xlu0 %700 }
 0x21a   :  { %v603_v1 = vpop.permute.xlu1 %602 }
 0x21b   :  { %v605_v57 = vsel %vm604_vm3, %v601_v47, %v603_v1  ;;  %v606_v58 = vsel %vm604_vm3, %v603_v1, %v601_v47  ;;  %v1773_v47 = vrot.slane %v1687_v48, %v708_v61 }
 0x21c   :  { %v615_v4 = vmul.f32 %v1697_v44, %v606_v58  ;;  %v616_v62 = vmul.f32 %v1700_v50, %v605_v57  ;;  %v1794_v57 = vld [vmem:[%s1920_s2 + $0x10] ss:$0 sm:$0xff]  ;;  %v1799_v58 = vld [vmem:[%s1920_s2 + $0x18] ss:$0 sm:$0xff] }
 0x21e   :  { %v620_v59 = vpop.permute.xlu1 %619 }
 0x21f   :  { %v622_v10 = vsel %vm621_vm4, %v618_v0, %v620_v59  ;;  %v623_v60 = vsel %vm621_vm4, %v620_v59, %v618_v0  ;;  %v1776_v0 = vrot.slane %v1693_v53, %v708_v61 }
 0x220   :  { %v632_v15 = vmul.f32 %v1704_v12, %v623_v60  ;;  %v633_v63 = vmul.f32 %v1707_v49, %v622_v10 }
 0x222   :  { %v733_v16 = vpack.c.bf16 %v632_v15, %v615_v4  ;;  %v637_v17 = vpop.permute.xlu1 %636  ;;  %v734_v20 = vpack.c.bf16 %v633_v63, %v616_v62 }
 0x223   :  { %v639_v26 = vsel %vm638_vm5, %v635_v55, %v637_v17  ;;  %v640_v9 = vsel %vm638_vm5, %v637_v17, %v635_v55  ;;  %v743_v17 = vld [vmem:[%s1921_s3] sm:$0xf] }
 0x224   :  { %755 = vmatprep.subr.bf16.mxu0 %v734_v20  ;;  %v649_v32 = vmul.f32 %v1725_v21, %v640_v9  ;;  %v650_v33 = vmul.f32 %v1729_v24, %v639_v26 }
 0x225   :  { %756 = vmatpush1.bf16.msra.mxu0 %v733_v16 }
 0x226   :  { %v654_v27 = vpop.permute.xlu1 %653 }
 0x227   :  { %v656_v28 = vsel %vm655_vm6, %v652_v8, %v654_v27  ;;  %v657_v29 = vsel %vm655_vm6, %v654_v27, %v652_v8  ;;  %v717_v8 = vpop.permute.xlu0 %716 }
 0x228   :  { %v666_v34 = vmul.f32 %v1733_v25, %v657_v29  ;;  %v667_v35 = vmul.f32 %v1736_v11, %v656_v28 }
 0x22a   :  { %v735_v37 = vpack.c.bf16 %v666_v34, %v649_v32  ;;  %v671_v38 = vpop.permute.xlu1 %670  ;;  %v736_v39 = vpack.c.bf16 %v667_v35, %v650_v33 }
 0x22b   :  { %v672_v40 = vsel %vm144_vm0, %v669_v23, %v671_v38  ;;  %v673_v41 = vsel %vm144_vm0, %v671_v38, %v669_v23 }
 0x22c   :  { %v682_v42 = vmul.f32 %v1747_v30, %v672_v40  ;;  %v683_v43 = vmul.f32 %v1750_v31, %v673_v41  ;;  %757 = vmatprep.subr.bf16.mxu0 %v736_v39  ;;  %v809_v39 = vld [vmem:[%s1923_s5] sm:$0xff] }
 0x22d   :  { %758 = vmatpush1.bf16.msra.mxu0 %v735_v37 }
 0x22e   :  { %v737_v3 = vpack.c.bf16 %v682_v42, %v1644_v51  ;;  %v687_v5 = vpop.permute.xlu1 %686  ;;  %v738_v6 = vpack.c.bf16 %v683_v43, %v1662_v19  ;;  %v813_v42 = vld [vmem:[%s1924_s6] sm:$0xff] }
 0x22f   :  { %v688_v51 = vsel %vm161_vm1, %v685_v36, %v687_v5  ;;  %v689_v19 = vsel %vm161_vm1, %v687_v5, %v685_v36 }
 0x230   :  { %759 = vmatprep.subr.bf16.mxu0 %v738_v6  ;;  %v698_v48 = vmul.f32 %v1767_v18, %v688_v51  ;;  %v699_v2 = vmul.f32 %v1770_v46, %v689_v19 }
 0x231   :  { %760 = vmatpush1.bf16.msra.mxu0 %v737_v3 }
 0x232   :  { %v703_v52 = vpop.permute.xlu1 %702 }
 0x233   :  { %v704_v54 = vsel %vm178_vm2, %v701_v7, %v703_v52  ;;  %v705_v55 = vsel %vm178_vm2, %v703_v52, %v701_v7 }
 0x234   :  { %v714_v53 = vmul.f32 %v1773_v47, %v704_v54  ;;  %v715_v1 = vmul.f32 %v1776_v0, %v705_v55 }
 0x236   :  { %v739_v59 = vpack.c.bf16 %v714_v53, %v698_v48  ;;  %v719_v10 = vpop.permute.xlu1 %718  ;;  %v740_v60 = vpack.c.bf16 %v715_v1, %v699_v2 }
 0x237   :  { %v721_v14 = vsel %vm720_vm7, %v717_v8, %v719_v10  ;;  %v722_v13 = vsel %vm720_vm7, %v719_v10, %v717_v8 }
 0x238   :  { %v731_v4 = vmul.f32 %v1794_v57, %v721_v14  ;;  %v732_v62 = vmul.f32 %v1799_v58, %v722_v13  ;;  %761 = vmatprep.subr.bf16.mxu0 %v740_v60 }
 0x239   :  { %762 = vmatpush1.bf16.msra.mxu0 %v739_v59 }
 0x23a   :  { %v741_v15 = vpack.c.bf16 %v731_v4, %v731_v4  ;;  %v742_v63 = vpack.c.bf16 %v732_v62, %v732_v62 }
 0x23c   :  { %1047 = vmatprep.subr.msk.bf16.mxu0 %vm748_vm8, %v742_v63  ;;  %v750_v16 = vsel %vm748_vm8, %v741_v15, 0 }
 0x23d   :  { %764 = vmatpush1.bf16.msra.mxu0 %v750_v16 }
 0x240   :  { %1048 = vmatmul.mubr.msk.bf16.vlgmr.msra.gmra.mrb[8].mxu0 %vm744_vm9, %v743_v17 }
 0x313   :  { %v789_v20 = vpop.f32.mrb[8].mxu0 }
 0x314   :  { %v791_v22 = vpop.f32.mrb[9].mxu0 }
 0x315   :  { %v793_v23 = vpop.f32.mrb[10].mxu0  ;;  %v796_v26 = vadd.f32 %v791_v22, %v789_v20 }
 0x316   :  { %v794_v9 = vpop.f32.mrb[11].mxu0 }
 0x317   :  { %797 = vadd.xlane.f32.xlu0 %v796_v26 }
 0x3a4   :  { %v798_v27 = vpop.xlane.xlu0 %797 }
 0x3a5   :  { %v800_v28 = vmul.f32 0.00390625, %v798_v27 }
 0x3a7   :  { %v801_v29 = vsub.f32 %v789_v20, %v800_v28  ;;  %v802_v32 = vsub.f32 %v791_v22, %v800_v28 }
 0x3a9   :  { %v803_v33 = vmul.f32 %v801_v29, %v801_v29  ;;  %v804_v34 = vmul.f32 %v802_v32, %v802_v32 }
 0x3ab   :  { %v805_v35 = vadd.f32 %v804_v34, %v803_v33 }
 0x3ad   :  { %806 = vadd.xlane.f32.xlu1 %v805_v35 }
 0x43a   :  { %v807_v36 = vpop.xlane.xlu1 %806 }
 0x43b   :  { %v808_v37 = vmul.f32 0.00390625, %v807_v36 }
 0x43d   :  { %v810_v38 = vadd.f32 1e-05, %v808_v37 }
 0x43f   :  { %1250 = vrsqrt.f32 %v810_v38 }
 0x449   :  { %v1251_v40 = vpop.eup %1250 }
 0x44a   :  { %v812_v41 = vmul.f32 %v1251_v40, %v809_v39 }
 0x44c   :  { %818 = vperm.xlu0 %1216, %v812_v41   ;;  %v814_v43 = vmul.f32 %v812_v41, %v800_v28 }
 0x44e   :  { %v815_v56 = vsub.f32 %v813_v42, %v814_v43 }
 0x450   :  { %825 = vperm.xlu1 %1217, %v815_v56  }
 0x4cb   :  { %v819_v61 = vpop.permute.xlu0 %818 }
 0x4cc   :  { %v821_v3 = vmul.f32 %v819_v61, %v789_v20  ;;  %v822_v6 = vmul.f32 %v819_v61, %v791_v22 }
 0x4cf   :  { %v826_v5 = vpop.permute.xlu1 %825 }
 0x4d0   :  { %v828_v7 = vadd.f32 %v826_v5, %v821_v3  ;;  %v829_v51 = vadd.f32 %v826_v5, %v822_v6 }
 0x4d2   :  { %v1819_v19 = vmax.f32 %v828_v7, 0.0  ;;  %v831_v52 = vmax.f32 %v829_v51, 0.0 }
 0x4d4   :  { %856 = vrot.lane.b32.xlu0 %v1819_v19, %s1337_s19  ;;  %832 = vrot.lane.b32.xlu1 %v1819_v19, %s1331_s10 }
 0x4d8   :  { %864 = vrot.lane.b32.xlu0 %v1819_v19, %s1333_s16  ;;  %834 = vrot.lane.b32.xlu1 %v831_v52, %s1331_s10 }
 0x4dc   :  { %872 = vrot.lane.b32.xlu0 %v1819_v19, %s1332_s15  ;;  %840 = vrot.lane.b32.xlu1 %v1819_v19, %s1335_s17 }
 0x4e0   :  { %880 = vrot.lane.b32.xlu0 %v1819_v19, %s1334_s1  ;;  %842 = vrot.lane.b32.xlu1 %v831_v52, %s1335_s17 }
 0x4e4   :  { %888 = vrot.lane.b32.xlu0 %v1819_v19, %s1338_s20  ;;  %848 = vrot.lane.b32.xlu1 %v1819_v19, %s1336_s18 }
 0x4e8   :  { %850 = vrot.lane.b32.xlu1 %v831_v52, %s1336_s18 }
 0x4ec   :  { %858 = vrot.lane.b32.xlu1 %v831_v52, %s1337_s19 }
 0x4f0   :  { %866 = vrot.lane.b32.xlu1 %v831_v52, %s1333_s16 }
 0x4f4   :  { %874 = vrot.lane.b32.xlu1 %v831_v52, %s1332_s15  ;;  %s1000_s15 = sshll.u32 %s1340_s14, 4  ;;  %s1001_s15 = int_to_ptr.vmem [resolvable:$true] %s1000_s15 }
 0x4f5   :  { %p1303_p3 = scmp.lt.s32.totalorder %s1001_s15, %s1001_s15 }
 0x4f8   :  { %882 = vrot.lane.b32.xlu1 %v831_v52, %s1334_s1 }
 0x4fc   :  { %890 = vrot.lane.b32.xlu1 %v831_v52, %s1338_s20 }
 0x546   :  { %v833_v54 = vpop.permute.xlu1 %832  ;;  %v857_v4 = vpop.permute.xlu0 %856 }
 0x54a   :  { %v835_v55 = vpop.permute.xlu1 %834  ;;  %v865_v17 = vpop.permute.xlu0 %864 }
 0x54b   :  { %v836_v2 = vsel %vm604_vm3, %v833_v54, %v835_v55  ;;  %v837_v53 = vsel %vm604_vm3, %v835_v55, %v833_v54 }
 0x54c   :  { %v838_v10 = vmul.f32 %v837_v53, %v1697_v44  ;;  %v839_v60 = vmul.f32 %v836_v2, %v1700_v50 }
 0x54e   :  { %v841_v48 = vpop.permute.xlu1 %840  ;;  %v873_v27 = vpop.permute.xlu0 %872 }
 0x552   :  { %v843_v1 = vpop.permute.xlu1 %842  ;;  %v881_v36 = vpop.permute.xlu0 %880 }
 0x553   :  { %v844_v8 = vsel %vm621_vm4, %v841_v48, %v843_v1  ;;  %v845_v59 = vsel %vm621_vm4, %v843_v1, %v841_v48 }
 0x554   :  { %v846_v14 = vmul.f32 %v845_v59, %v1704_v12  ;;  %v847_v13 = vmul.f32 %v844_v8, %v1707_v49 }
 0x556   :  { %v896_v62 = vpack.c.bf16 %v846_v14, %v838_v10  ;;  %v849_v15 = vpop.permute.xlu1 %848  ;;  %v897_v63 = vpack.c.bf16 %v847_v13, %v839_v60  ;;  %v889_v56 = vpop.permute.xlu0 %888  ;;  %v969_v13 = vld [vmem:[%s1925_s7] sm:$0xff]  ;;  %s1298_s7 = scalar_lea.vmem %s1001_s15, 256 }
 0x557   :  { %p1299_p2 = scmp.ne.s32.totalorder %s1001_s15, %s1298_s7  ;;  %p1304_p4 = scmp.lt.s32.totalorder %s1298_s7, %s1298_s7 }
 0x558   :  { %916 = vmatprep.subr.bf16.mxu1 %v897_v63 }
 0x559   :  { %917 = vmatpush1.bf16.msra.mxu1 %v896_v62  ;;  %p1305_p5 = por %p1304_p4, %p1303_p3 }
 0x55a   :  { %v851_v16 = vpop.permute.xlu1 %850 }
 0x55b   :  { %v852_v20 = vsel %vm638_vm5, %v849_v15, %v851_v16  ;;  %v853_v44 = vsel %vm638_vm5, %v851_v16, %v849_v15  ;;  %v973_v15 = vld [vmem:[%s1926_s8] sm:$0xff]  ;;  %p1306_p6 = pnand %p1305_p5, %p1299_p2 }
 0x55c   :  { %v854_v49 = vmul.f32 %v853_v44, %v1725_v21  ;;  %v855_v23 = vmul.f32 %v852_v20, %v1729_v24 }
 0x55e   :  { %v859_v22 = vpop.permute.xlu1 %858 }
 0x55f   :  { %v860_v50 = vsel %vm655_vm6, %v857_v4, %v859_v22  ;;  %v861_v12 = vsel %vm655_vm6, %v859_v22, %v857_v4 }
 0x560   :  { %v862_v26 = vmul.f32 %v861_v12, %v1733_v25  ;;  %v863_v9 = vmul.f32 %v860_v50, %v1736_v11 }
 0x562   :  { %v898_v28 = vpack.c.bf16 %v862_v26, %v854_v49  ;;  %v867_v29 = vpop.permute.xlu1 %866  ;;  %v899_v32 = vpack.c.bf16 %v863_v9, %v855_v23 }
 0x563   :  { %v868_v33 = vsel %vm144_vm0, %v865_v17, %v867_v29  ;;  %v869_v34 = vsel %vm144_vm0, %v867_v29, %v865_v17 }
 0x564   :  { %v870_v35 = vmul.f32 %v868_v33, %v1747_v30  ;;  %v871_v21 = vmul.f32 %v869_v34, %v1750_v31  ;;  %918 = vmatprep.subr.bf16.mxu1 %v899_v32 }
 0x565   :  { %919 = vmatpush1.bf16.msra.mxu1 %v898_v28 }
 0x566   :  { %v900_v24 = vpack.c.bf16 %v870_v35, %v1819_v19  ;;  %v875_v25 = vpop.permute.xlu1 %874  ;;  %v901_v11 = vpack.c.bf16 %v871_v21, %v831_v52  ;;  %v906_v19 = vld [vmem:[%s1922_s4] sm:$0xf] }
 0x567   :  { %v876_v37 = vsel %vm161_vm1, %v873_v27, %v875_v25  ;;  %v877_v38 = vsel %vm161_vm1, %v875_v25, %v873_v27 }
 0x568   :  { %920 = vmatprep.subr.bf16.mxu1 %v901_v11  ;;  %v878_v40 = vmul.f32 %v876_v37, %v1767_v18  ;;  %v879_v41 = vmul.f32 %v877_v38, %v1770_v46 }
 0x569   :  { %921 = vmatpush1.bf16.msra.mxu1 %v900_v24 }
 0x56a   :  { %v883_v39 = vpop.permute.xlu1 %882 }
 0x56b   :  { %v884_v30 = vsel %vm178_vm2, %v881_v36, %v883_v39  ;;  %v885_v31 = vsel %vm178_vm2, %v883_v39, %v881_v36 }
 0x56c   :  { %v886_v42 = vmul.f32 %v884_v30, %v1773_v47  ;;  %v887_v43 = vmul.f32 %v885_v31, %v1776_v0 }
 0x56e   :  { %v902_v61 = vpack.c.bf16 %v886_v42, %v878_v40  ;;  %v891_v3 = vpop.permute.xlu1 %890  ;;  %v903_v5 = vpack.c.bf16 %v887_v43, %v879_v41 }
 0x56f   :  { %v892_v6 = vsel %vm720_vm7, %v889_v56, %v891_v3  ;;  %v893_v7 = vsel %vm720_vm7, %v891_v3, %v889_v56 }
 0x570   :  { %v894_v51 = vmul.f32 %v1794_v57, %v892_v6  ;;  %v895_v18 = vmul.f32 %v1799_v58, %v893_v7  ;;  %922 = vmatprep.subr.bf16.mxu1 %v903_v5 }
 0x571   :  { %923 = vmatpush1.bf16.msra.mxu1 %v902_v61 }
 0x572   :  { %v904_v46 = vpack.c.bf16 %v894_v51, %v894_v51  ;;  %v905_v47 = vpack.c.bf16 %v895_v18, %v895_v18 }
 0x574   :  { %1049 = vmatprep.subr.msk.bf16.mxu1 %vm748_vm8, %v905_v47  ;;  %v911_v0 = vsel %vm748_vm8, %v904_v46, 0 }
 0x575   :  { %925 = vmatpush1.bf16.msra.mxu1 %v911_v0 }
 0x578   :  { %1050 = vmatmul.mubr.msk.bf16.vlgmr.msra.gmra.mrb[8].mxu1 %vm744_vm9, %v906_v19 }
 0x64b   :  { %v950_v45 = vpop.f32.mrb[8].mxu1 }
 0x64c   :  { %v952_v52 = vpop.f32.mrb[9].mxu1 }
 0x64d   :  { %v954_v57 = vpop.f32.mrb[10].mxu1  ;;  %v957_v54 = vadd.f32 %v952_v52, %v950_v45 }
 0x64e   :  { %v955_v58 = vpop.f32.mrb[11].mxu1 }
 0x64f   :  { %958 = vadd.xlane.f32.xlu0 %v957_v54 }
 0x6dc   :  { %v959_v55 = vpop.xlane.xlu0 %958 }
 0x6dd   :  { %v960_v48 = vmul.f32 0.00390625, %v959_v55 }
 0x6df   :  { %v961_v2 = vsub.f32 %v950_v45, %v960_v48  ;;  %v962_v53 = vsub.f32 %v952_v52, %v960_v48 }
 0x6e1   :  { %v963_v1 = vmul.f32 %v961_v2, %v961_v2  ;;  %v964_v8 = vmul.f32 %v962_v53, %v962_v53 }
 0x6e3   :  { %v965_v59 = vadd.f32 %v964_v8, %v963_v1 }
 0x6e5   :  { %966 = vadd.xlane.f32.xlu1 %v965_v59 }
 0x772   :  { %v967_v10 = vpop.xlane.xlu1 %966 }
 0x773   :  { %v968_v60 = vmul.f32 0.00390625, %v967_v10 }
 0x775   :  { %v970_v14 = vadd.f32 1e-05, %v968_v60 }
 0x777   :  { %1252 = vrsqrt.f32 %v970_v14 }
 0x781   :  { %v1253_v4 = vpop.eup %1252 }
 0x782   :  { %v972_v62 = vmul.f32 %v1253_v4, %v969_v13 }
 0x784   :  { %978 = vperm.xlu0 %1216, %v972_v62   ;;  %v974_v63 = vmul.f32 %v972_v62, %v960_v48 }
 0x786   :  { %v975_v16 = vsub.f32 %v973_v15, %v974_v63 }
 0x788   :  { %985 = vperm.xlu1 %1217, %v975_v16  }
 0x803   :  { %v979_v17 = vpop.permute.xlu0 %978 }
 0x804   :  { %v981_v20 = vmul.f32 %v979_v17, %v950_v45  ;;  %v982_v44 = vmul.f32 %v979_v17, %v952_v52 }
 0x807   :  { %v986_v22 = vpop.permute.xlu1 %985 }
 0x808   :  { %v988_v50 = vadd.f32 %v986_v22, %v981_v20  ;;  %v989_v12 = vadd.f32 %v986_v22, %v982_v44 }
 0x80a   :  { %v990_v49 = vmax.f32 %v988_v50, 0.0  ;;  %v991_v23 = vmax.f32 %v989_v12, 0.0 }
 0x80c   :  { %992 = vst [vmem:[#allocation7] sm:$0xff] %v990_v49  ;;  %994 = vst [vmem:[#allocation7 + $0x8] sm:$0xff] %v991_v23 }
 0x80d   :  { %1309 = shalt.err (!%p1306_p6)
}
 0x80e   :  { %s1310_s1 = scalar_lea.hbm %s1927_s9, 256 }
 0x80f   :  { %p1311_p7 = scmp.ne.s32.totalorder %s1927_s9, %s1310_s1  ;;  %p1314_p8 = scmp.lt.u32.totalorder %s1310_s1, %s1927_s9 }
 0x811   :  { %p1316_p9 = pnand %p1314_p8, %p1311_p7 }
 0x813   :  { %1319 = shalt.err (!%p1316_p9)
}
 0x814   :  { %s1341_s21 = smov 128   ;;  %s1342_s22 = smov 8  }
 0x815   :  { %1006 = dma.vmem_to_hbm [thread:$0]  %s1001_s15, 256, %s1927_s9, [#allocation4], %s1341_s21, %s1341_s21, %s1342_s22  }
 0x816   :  { %1324 = dma.done.wait [#allocation4], 256  }
 0x817   :  { %1325 = vsyncadd [#allocation4], 4294967040 }
 0x818   :  { %1010 = vsyncpa [#allocation3], 1 }
 0x819   :  { %1011 = vsyncpa [#allocation6], 1 }
 0x81a   :  { %1012 = vsyncpa [#allocation4], 1 }

</bundles_post_ra>
